<compile_context>
chip_gen: v7x
topology: tpu7x:2x2x1
jax: 0.10.0
libtpu: 0.0.40
codegen_flags: <defaults>
</compile_context>

<pallas_src>
import jax
import jax.numpy as jnp
from jax.experimental import pallas as pl
from jax.experimental.pallas import tpu as pltpu

# ---- synthetic config (mirrors config.N_QUANT / config.VAL_FEATURE / HIDDEN) ----
FEAT = 16        # env feature dim
HIDDEN = 32      # embedding dim produced by Env
N_QUANT = 8      # config.N_QUANT
OUT_DIM = 8      # ActionNet outDim=8
VAL_FEATURE = 1  # add_features = int(config.VAL_FEATURE)

HEAD_LANES = N_QUANT + OUT_DIM   # merged [wv | waq] head width (16 lanes)

# ---- packed parameter slab layout (row offsets are multiples of 16 so static
#      slices stay aligned for bf16 sublane packing; payload in low lanes) ----
OFF_W1 = 0        # (FEAT,   HIDDEN)
OFF_B1 = 16       # (1,      HIDDEN)
OFF_W2 = 32       # (HIDDEN, HIDDEN)
OFF_B2 = 64       # (1,      HIDDEN)
OFF_WH = 80       # (HIDDEN, HEAD_LANES)  == [wv | was@avg]   (avg folded offline)
OFF_BH = 112      # (1,      HEAD_LANES)  == [bv | ba@avg]
OFF_WAVQ = 128    # (1,      OUT_DIM)     == wav@avg
W_ROWS = 144      # multiple of 16
W_LANES = 128

OUT_LANES = 128                   # fused output slab width (lane-dense)
IDX_LANE = N_QUANT + OUT_DIM      # lane 16 carries actionIdx (exact in bf16)
MAX_TILE_B = 512                  # rows per grid step cap (writeback-bound past this)


def _round_up(x, m):
    return ((x + m - 1) // m) * m


def _choose_tile_b(batch):
    # Large tiles amortize the ~0.35 us per-grid-step overhead; keep >= 2 grid
    # blocks when the batch allows it so both v7x TensorCores get work.
    half = _round_up(max(1, (batch + 1) // 2), 16)
    return max(16, min(MAX_TILE_B, half))


def ann_kernel(env_ref, w_ref, out_ref):
    f32 = jnp.float32
    bf16 = jnp.bfloat16
    x = env_ref[...].astype(bf16)                                   # (TB, FEAT)

    # --- static views into the packed bf16 parameter slab ---
    w1 = w_ref[OFF_W1:OFF_W1 + FEAT, 0:HIDDEN]
    b1 = w_ref[OFF_B1:OFF_B1 + 1, 0:HIDDEN].astype(f32)
    w2 = w_ref[OFF_W2:OFF_W2 + HIDDEN, 0:HIDDEN]
    b2 = w_ref[OFF_B2:OFF_B2 + 1, 0:HIDDEN].astype(f32)
    wh = w_ref[OFF_WH:OFF_WH + HIDDEN, 0:HEAD_LANES]                # [wv | waq]
    bh = w_ref[OFF_BH:OFF_BH + 1, 0:HEAD_LANES].astype(f32)         # [bv | baq]
    wavq = w_ref[OFF_WAVQ:OFF_WAVQ + 1, 0:OUT_DIM].astype(f32)

    # --- Env: 2-layer MLP -> state embedding s (bf16 MXU operands, f32 accum,
    #     f32 elementwise: v5e has no bf16 VPU path) ---
    h = jnp.maximum(jnp.dot(x, w1, preferred_element_type=f32) + b1, 0.0)
    s = jnp.maximum(
        jnp.dot(h.astype(bf16), w2, preferred_element_type=f32) + b2, 0.0)
    s16 = s.astype(bf16)

    # --- merged heads: one MXU matmul yields [val | q_pre] in 16 lanes ---
    heads = jnp.dot(s16, wh, preferred_element_type=f32) + bh       # (TB, 16)
    val = heads[:, 0:N_QUANT]                                       # ValNet out
    # v = val.detach().mean(2)  (forward-only kernel, no grad concerns)
    v = jnp.mean(val, axis=-1, keepdims=True)                       # (TB, 1)

    # --- ActionNet with the quantile-average folded into the weights:
    #     q = mean_quant([s, v] @ W_a + b_a) == s@waq + v*wavq + baq ---
    q = heads[:, N_QUANT:N_QUANT + OUT_DIM] + v * wavq              # (TB, OUT_DIM)

    # pi = softmax over actions; greedy action (eps=0, punishmentsLm=None)
    q_max = jnp.max(q, axis=-1, keepdims=True)
    e = jnp.exp(q - q_max)
    pi = e * pl.reciprocal(jnp.sum(e, axis=-1, keepdims=True), approx=True)

    # argmax (first maximal index, like torch.argmax)
    col = jax.lax.broadcasted_iota(jnp.int32, q.shape, 1)
    idx = jnp.min(jnp.where(q >= q_max, col, jnp.int32(2 ** 30)),
                  axis=-1, keepdims=True)

    # --- single full-width unmasked store of the fused lane-dense bf16 slab:
    #     [val(8) | pi(8) | idx(1) | zero pad] -> one writeback per grid step ---
    pad = jnp.zeros((val.shape[0], OUT_LANES - IDX_LANE - 1), jnp.float32)
    block = jnp.concatenate([val, pi, idx.astype(jnp.float32), pad], axis=-1)
    out_ref[...] = block.astype(out_ref.dtype)


def init_params(key):
    # TODO(synk): the original Env/ValNet/ActionNet use NoisyLinear layers
    # (reset_noise) whose source was not provided; noise is treated as disabled
    # and the heads are plain linears.
    ks = jax.random.split(key, 4)
    aq = OUT_DIM * N_QUANT

    def lin(k, fan_in, fan_out):
        return (jax.random.normal(k, (fan_in, fan_out), jnp.float32)
                / jnp.sqrt(jnp.float32(fan_in)))

    w1 = lin(ks[0], FEAT, HIDDEN)
    b1 = jnp.zeros((1, HIDDEN), jnp.float32)
    w2 = lin(ks[1], HIDDEN, HIDDEN)
    b2 = jnp.zeros((1, HIDDEN), jnp.float32)
    wv = lin(ks[2], HIDDEN, N_QUANT)
    bv = jnp.zeros((1, N_QUANT), jnp.float32)
    wa = lin(ks[3], HIDDEN + VAL_FEATURE, aq)   # ActionNet weight over [s, v]
    ba = jnp.zeros((1, aq), jnp.float32)

    # fold the quantile-averaging matmul into the action head offline
    avg = (jnp.repeat(jnp.eye(OUT_DIM, dtype=jnp.float32), N_QUANT, axis=0)
           / jnp.float32(N_QUANT))                         # (aq, OUT_DIM)
    waq = wa[:HIDDEN] @ avg                                # (HIDDEN, OUT_DIM)
    wavq = wa[HIDDEN:HIDDEN + VAL_FEATURE] @ avg           # (1, OUT_DIM)
    baq = ba @ avg                                         # (1, OUT_DIM)

    # pack everything into a single (W_ROWS, 128) slab, cast to bf16;
    # the two heads live in ONE contiguous 16-lane block (single head matmul).
    slab = jnp.zeros((W_ROWS, W_LANES), jnp.float32)
    slab = slab.at[OFF_W1:OFF_W1 + FEAT, :HIDDEN].set(w1)
    slab = slab.at[OFF_B1:OFF_B1 + 1, :HIDDEN].set(b1)
    slab = slab.at[OFF_W2:OFF_W2 + HIDDEN, :HIDDEN].set(w2)
    slab = slab.at[OFF_B2:OFF_B2 + 1, :HIDDEN].set(b2)
    slab = slab.at[OFF_WH:OFF_WH + HIDDEN, 0:N_QUANT].set(wv)
    slab = slab.at[OFF_WH:OFF_WH + HIDDEN, N_QUANT:HEAD_LANES].set(waq)
    slab = slab.at[OFF_BH:OFF_BH + 1, 0:N_QUANT].set(bv)
    slab = slab.at[OFF_BH:OFF_BH + 1, N_QUANT:HEAD_LANES].set(baq)
    slab = slab.at[OFF_WAVQ:OFF_WAVQ + 1, :OUT_DIM].set(wavq)
    return slab.astype(jnp.bfloat16)


def ann_forward(env, packed_w, eps=0, punishmentsLm=None, v=None):
    # TODO(synk): eps-greedy exploration / external punishments / external v
    # are not exercised (eps=0, punishmentsLm=None, v=None path of the original).
    B = env.shape[0]
    tile_b = _choose_tile_b(B)
    n_blocks = -(-B // tile_b)
    Bp = n_blocks * tile_b
    # Padding only when the producer batch is not a tile multiple (tiny here;
    # production callers should pick batch sizes divisible by the tile).
    env_p = env if Bp == B else jnp.pad(env, ((0, Bp - B), (0, 0)))

    out = pl.pallas_call(
        ann_kernel,
        out_shape=jax.ShapeDtypeStruct((Bp, OUT_LANES), jnp.bfloat16),
        grid_spec=pltpu.PrefetchScalarGridSpec(
            num_scalar_prefetch=0,
            grid=(n_blocks,),
            in_specs=[
                pl.BlockSpec((tile_b, FEAT), lambda i: (i, 0)),
                # constant block index -> parameter slab resident across steps
                pl.BlockSpec((W_ROWS, W_LANES), lambda i: (0, 0)),
            ],
            out_specs=pl.BlockSpec((tile_b, OUT_LANES), lambda i: (i, 0)),
        ),
        compiler_params=pltpu.CompilerParams(
            dimension_semantics=("parallel",)),
    )(env_p, packed_w)

    val = out[:B, 0:N_QUANT].astype(jnp.float32).reshape(B, 1, N_QUANT)
    pi = out[:B, N_QUANT:N_QUANT + OUT_DIM].astype(jnp.float32)
    action_idx = out[:B, IDX_LANE].astype(jnp.int32)
    outputs = {"action": (pi, action_idx)}             # (pi, actionIdx)
    return outputs, val


def _ref_forward(env, packed_w):
    # pure-JAX f32 reference computed from the same bf16 slab
    w = packed_w.astype(jnp.float32)
    x = env.astype(jnp.float32)
    w1 = w[OFF_W1:OFF_W1 + FEAT, :HIDDEN]
    b1 = w[OFF_B1, :HIDDEN]
    w2 = w[OFF_W2:OFF_W2 + HIDDEN, :HIDDEN]
    b2 = w[OFF_B2, :HIDDEN]
    wh = w[OFF_WH:OFF_WH + HIDDEN, :HEAD_LANES]
    bh = w[OFF_BH, :HEAD_LANES]
    wavq = w[OFF_WAVQ, :OUT_DIM]
    h = jnp.maximum(x @ w1 + b1, 0.0)
    s = jnp.maximum(h @ w2 + b2, 0.0)
    heads = s @ wh + bh
    val = heads[:, :N_QUANT]
    q = heads[:, N_QUANT:] + val.mean(-1, keepdims=True) * wavq[None, :]
    pi = jax.nn.softmax(q, axis=-1)
    return val, pi


if __name__ == "__main__":
    key = jax.random.PRNGKey(0)
    k_param, k_env = jax.random.split(key)
    packed_w = init_params(k_param)
    # producer emits bf16 env directly (halves input DMA, no wrapper cast op)
    env = jax.random.normal(k_env, (2, FEAT), jnp.bfloat16)   # batch=2

    outputs, val = ann_forward(env, packed_w)
    pi, action_idx = outputs["action"]
    jax.block_until_ready((pi, action_idx, val))

    assert val.shape == (2, 1, N_QUANT)
    assert pi.shape == (2, OUT_DIM)
    assert action_idx.shape == (2,)
    assert bool(jnp.all(jnp.isfinite(val))) and bool(jnp.all(jnp.isfinite(pi)))
    assert bool(jnp.all((action_idx >= 0) & (action_idx < OUT_DIM)))
    assert bool(jnp.all(jnp.abs(jnp.sum(pi, axis=-1) - 1.0) < 2e-2))

    # loose numerical check against a pure-JAX f32 reference (bf16 MXU operands,
    # approx reciprocal and bf16 output slab account for the tolerance)
    val_ref, pi_ref = _ref_forward(env, packed_w)
    assert bool(jnp.all(jnp.abs(val[:, 0, :] - val_ref) < 0.1))
    assert bool(jnp.all(jnp.abs(pi - pi_ref) < 0.05))
    print("KERNEL_OK")
</pallas_src>

<mosaic_0001>
module attributes {stable_mosaic.version = 11 : i64} {
  func.func @ann_kernel(%arg0: i32, %arg1: memref<16x16xbf16, #tpu.memory_space<vmem>>, %arg2: memref<144x128xbf16, #tpu.memory_space<vmem>>, %arg3: memref<16x128xbf16, #tpu.memory_space<vmem>>) attributes {dimension_semantics = [#tpu.dimension_semantics<parallel>], iteration_bounds = array<i64: 1>, scalar_prefetch = 0 : i64, scratch_operands = 0 : i64, tpu.core_type = #tpu.core_type<tc>, window_params = [{transform_indices = @transform_0, window_bounds = array<i64: 16, 16>}, {pipeline_mode = #tpu.pipeline_mode<synchronous>, transform_indices = @transform_1, window_bounds = array<i64: 144, 128>}, {transform_indices = @transform_2, window_bounds = array<i64: 16, 128>}]} {
    %c0 = arith.constant 0 : index
    %c0_0 = arith.constant 0 : index
    %0 = vector.load %arg1[%c0, %c0_0] : memref<16x16xbf16, #tpu.memory_space<vmem>>, vector<16x16xbf16>
    %c0_1 = arith.constant 0 : index
    %c0_2 = arith.constant 0 : index
    %1 = vector.load %arg2[%c0_1, %c0_2] : memref<144x128xbf16, #tpu.memory_space<vmem>>, vector<16x32xbf16>
    %c16 = arith.constant 16 : index
    %c0_3 = arith.constant 0 : index
    %2 = vector.load %arg2[%c16, %c0_3] : memref<144x128xbf16, #tpu.memory_space<vmem>>, vector<1x32xbf16>
    %3 = arith.extf %2 : vector<1x32xbf16> to vector<1x32xf32>
    %c32 = arith.constant 32 : index
    %c0_4 = arith.constant 0 : index
    %4 = vector.load %arg2[%c32, %c0_4] : memref<144x128xbf16, #tpu.memory_space<vmem>>, vector<32x32xbf16>
    %c64 = arith.constant 64 : index
    %c0_5 = arith.constant 0 : index
    %5 = vector.load %arg2[%c64, %c0_5] : memref<144x128xbf16, #tpu.memory_space<vmem>>, vector<1x32xbf16>
    %6 = arith.extf %5 : vector<1x32xbf16> to vector<1x32xf32>
    %c80 = arith.constant 80 : index
    %c0_6 = arith.constant 0 : index
    %7 = vector.load %arg2[%c80, %c0_6] : memref<144x128xbf16, #tpu.memory_space<vmem>>, vector<32x16xbf16>
    %c112 = arith.constant 112 : index
    %c0_7 = arith.constant 0 : index
    %8 = vector.load %arg2[%c112, %c0_7] : memref<144x128xbf16, #tpu.memory_space<vmem>>, vector<1x16xbf16>
    %9 = arith.extf %8 : vector<1x16xbf16> to vector<1x16xf32>
    %c128 = arith.constant 128 : index
    %c0_8 = arith.constant 0 : index
    %10 = vector.load %arg2[%c128, %c0_8] : memref<144x128xbf16, #tpu.memory_space<vmem>>, vector<1x8xbf16>
    %11 = arith.extf %10 : vector<1x8xbf16> to vector<1x8xf32>
    %cst = arith.constant dense<0.000000e+00> : vector<16x32xf32>
    %12 = tpu.matmul %0, %1, %cst {dimension_numbers = #tpu.dot_dimension_numbers<[1], [0], [0], [1], [0, 0, 1, 1], [], []>} : vector<16x16xbf16>, vector<16x32xbf16>, vector<16x32xf32> -> vector<16x32xf32>
    %13 = vector.broadcast %3 : vector<1x32xf32> to vector<16x32xf32>
    %14 = arith.addf %12, %13 : vector<16x32xf32>
    %cst_9 = arith.constant 0.000000e+00 : f32
    %15 = vector.broadcast %cst_9 : f32 to vector<16x32xf32>
    %16 = arith.maximumf %14, %15 : vector<16x32xf32>
    %17 = arith.truncf %16 : vector<16x32xf32> to vector<16x32xbf16>
    %cst_10 = arith.constant dense<0.000000e+00> : vector<16x32xf32>
    %18 = tpu.matmul %17, %4, %cst_10 {dimension_numbers = #tpu.dot_dimension_numbers<[1], [0], [0], [1], [0, 0, 1, 1], [], []>} : vector<16x32xbf16>, vector<32x32xbf16>, vector<16x32xf32> -> vector<16x32xf32>
    %19 = vector.broadcast %6 : vector<1x32xf32> to vector<16x32xf32>
    %20 = arith.addf %18, %19 : vector<16x32xf32>
    %cst_11 = arith.constant 0.000000e+00 : f32
    %21 = vector.broadcast %cst_11 : f32 to vector<16x32xf32>
    %22 = arith.maximumf %20, %21 : vector<16x32xf32>
    %23 = arith.truncf %22 : vector<16x32xf32> to vector<16x32xbf16>
    %cst_12 = arith.constant dense<0.000000e+00> : vector<16x16xf32>
    %24 = tpu.matmul %23, %7, %cst_12 {dimension_numbers = #tpu.dot_dimension_numbers<[1], [0], [0], [1], [0, 0, 1, 1], [], []>} : vector<16x32xbf16>, vector<32x16xbf16>, vector<16x16xf32> -> vector<16x16xf32>
    %25 = vector.broadcast %9 : vector<1x16xf32> to vector<16x16xf32>
    %26 = arith.addf %24, %25 : vector<16x16xf32>
    %27 = vector.extract_strided_slice %26 {offsets = [0, 0], sizes = [16, 8], strides = [1, 1]} : vector<16x16xf32> to vector<16x8xf32>
    %cst_13 = arith.constant dense<0.000000e+00> : vector<16xf32>
    %28 = vector.multi_reduction <add>, %27, %cst_13 [1] : vector<16x8xf32> to vector<16xf32>
    %29 = vector.shape_cast %28 : vector<16xf32> to vector<16x1xf32>
    %cst_14 = arith.constant 8.000000e+00 : f32
    %30 = vector.broadcast %cst_14 : f32 to vector<16x1xf32>
    %31 = arith.divf %29, %30 : vector<16x1xf32>
    %32 = vector.extract_strided_slice %26 {offsets = [0, 8], sizes = [16, 8], strides = [1, 1]} : vector<16x16xf32> to vector<16x8xf32>
    %33 = vector.broadcast %31 : vector<16x1xf32> to vector<16x8xf32>
    %34 = vector.broadcast %11 : vector<1x8xf32> to vector<16x8xf32>
    %35 = arith.mulf %33, %34 : vector<16x8xf32>
    %36 = arith.addf %32, %35 : vector<16x8xf32>
    %cst_15 = arith.constant dense<0xFF800000> : vector<16xf32>
    %37 = vector.multi_reduction <maximumf>, %36, %cst_15 [1] : vector<16x8xf32> to vector<16xf32>
    %38 = vector.shape_cast %37 : vector<16xf32> to vector<16x1xf32>
    %39 = vector.broadcast %38 : vector<16x1xf32> to vector<16x8xf32>
    %40 = arith.subf %36, %39 : vector<16x8xf32>
    %41 = math.exp %40 : vector<16x8xf32>
    %cst_16 = arith.constant dense<0.000000e+00> : vector<16xf32>
    %42 = vector.multi_reduction <add>, %41, %cst_16 [1] : vector<16x8xf32> to vector<16xf32>
    %43 = vector.shape_cast %42 : vector<16xf32> to vector<16x1xf32>
    %44 = tpu.reciprocal %43 {approx = true} : vector<16x1xf32> -> vector<16x1xf32>
    %45 = vector.broadcast %44 : vector<16x1xf32> to vector<16x8xf32>
    %46 = arith.mulf %41, %45 : vector<16x8xf32>
    %47 = tpu.iota {dimensions = array<i32: 1>} : vector<16x8xi32>
    %48 = vector.broadcast %38 : vector<16x1xf32> to vector<16x8xf32>
    %49 = arith.cmpf oge, %36, %48 : vector<16x8xf32>
    %c1073741824_i32 = arith.constant 1073741824 : i32
    %50 = vector.broadcast %c1073741824_i32 : i32 to vector<16x8xi32>
    %51 = arith.select %49, %47, %50 : vector<16x8xi1>, vector<16x8xi32>
    %cst_17 = arith.constant dense<2147483647> : vector<16xi32>
    %52 = vector.multi_reduction <minsi>, %51, %cst_17 [1] : vector<16x8xi32> to vector<16xi32>
    %53 = vector.shape_cast %52 : vector<16xi32> to vector<16x1xi32>
    %cst_18 = arith.constant 0.000000e+00 : f32
    %54 = vector.broadcast %cst_18 : f32 to vector<16x111xf32>
    %55 = arith.sitofp %53 : vector<16x1xi32> to vector<16x1xf32>
    %56 = tpu.concatenate %27, %46, %55, %54 in 1 : vector<16x8xf32>, vector<16x8xf32>, vector<16x1xf32>, vector<16x111xf32> -> vector<16x128xf32>
    %57 = arith.truncf %56 : vector<16x128xf32> to vector<16x128xbf16>
    %c0_19 = arith.constant 0 : index
    %c0_20 = arith.constant 0 : index
    %58 = vector.load %arg3[%c0_19, %c0_20] : memref<16x128xbf16, #tpu.memory_space<vmem>>, vector<16x128xbf16>
    tpu.vector_store %arg3[%c0_19, %c0_20], %57 {strides = array<i32>} : memref<16x128xbf16, #tpu.memory_space<vmem>>, vector<16x128xbf16>,
    return
  }
  func.func @transform_0(%arg0: i32) -> (i32, i32) {
    %c0_i32 = arith.constant 0 : i32
    %c0_i32_0 = arith.constant 0 : i32
    return %arg0, %c0_i32 : i32, i32
  }
  func.func @transform_1(%arg0: i32) -> (i32, i32) {
    %c0_i32 = arith.constant 0 : i32
    %c0_i32_0 = arith.constant 0 : i32
    %c0_i32_1 = arith.constant 0 : i32
    return %c0_i32, %c0_i32_0 : i32, i32
  }
  func.func @transform_2(%arg0: i32) -> (i32, i32) {
    %c0_i32 = arith.constant 0 : i32
    %c0_i32_0 = arith.constant 0 : i32
    return %arg0, %c0_i32 : i32, i32
  }
}

</mosaic_0001>

<bundles_post_ra>
// kernel: tpu_custom_call.1
= control target key start
LH: loop header
LB: loop body
LE: loop exit
PB: predicated region body
PF: predicated region fallthrough
CT: control target
= control target key end

     0   :  { %7 = vsyncpa [#allocation3], 0  ;;  %s619_s0 = inlined_call_operand.hbm [shape: bf16[16,16], index: 0, kind: input, shape index: {}]   ;;  %s620_s1 = inlined_call_operand.hbm [shape: bf16[144,128], index: 1, kind: input, shape index: {}]   ;;  %s621_s2 = inlined_call_operand.hbm [shape: bf16[16,128], index: 2, kind: output, shape index: {}]  }
   0x1   :  { %8 = vsyncpa [#allocation6], 0 }
   0x2   :  { %9 = vsyncpa [#allocation4], 0  ;;  %s523_s9 = smov [#allocation2]   ;;  %s451_s13 = scalar_lea.hbm %s619_s0, 128 }
   0x3   :  { %s15_s10 = sshll.u32 %s523_s9, 4  ;;  %p452_p0 = scmp.ne.s32.totalorder %s619_s0, %s451_s13  ;;  %s16_s10 = int_to_ptr.vmem [resolvable:$true] %s15_s10 }
   0x4   :  { %p455_p1 = scmp.lt.u32.totalorder %s451_s13, %s619_s0 }
   0x6   :  { %p457_p2 = pnand %p455_p1, %p452_p0 }
   0x8   :  { %460 = shalt.err (!%p457_p2)
}
   0x9   :  { %s461_s18 = scalar_lea.vmem %s16_s10, 128  ;;  %p466_p4 = scmp.lt.s32.totalorder %s16_s10, %s16_s10 }
   0xa   :  { %p462_p3 = scmp.ne.s32.totalorder %s16_s10, %s461_s18  ;;  %p467_p5 = scmp.lt.s32.totalorder %s461_s18, %s461_s18 }
   0xc   :  { %p468_p6 = por %p467_p5, %p466_p4 }
   0xe   :  { %p469_p7 = pnand %p468_p6, %p462_p3 }
  0x10   :  { %472 = shalt.err (!%p469_p7)
}
  0x11   :  { %s524_s19 = smov 64   ;;  %s525_s20 = smov 4  }
  0x12   :  { %21 = dma.hbm_to_vmem [thread:$0]  %s619_s0, 128, %s16_s10, [#allocation3], %s524_s19, %s524_s19, %s525_s20  }
  0x13   :  { %s526_s23 = smov [#allocation5]   ;;  %s473_s27 = scalar_lea.hbm %s620_s1, 1152 }
  0x14   :  { %s27_s24 = sshll.u32 %s526_s23, 4  ;;  %p474_p8 = scmp.ne.s32.totalorder %s620_s1, %s473_s27  ;;  %s28_s24 = int_to_ptr.vmem [resolvable:$true] %s27_s24 }
  0x15   :  { %p477_p9 = scmp.lt.u32.totalorder %s473_s27, %s620_s1 }
  0x17   :  { %p479_p10 = pnand %p477_p9, %p474_p8 }
  0x19   :  { %482 = shalt.err (!%p479_p10)
}
  0x1a   :  { %s483_s4 = scalar_lea.vmem %s28_s24, 1152  ;;  %p488_p12 = scmp.lt.s32.totalorder %s28_s24, %s28_s24 }
  0x1b   :  { %p484_p11 = scmp.ne.s32.totalorder %s28_s24, %s483_s4  ;;  %p489_p13 = scmp.lt.s32.totalorder %s483_s4, %s483_s4 }
  0x1d   :  { %p490_p0 = por %p489_p13, %p488_p12 }
  0x1f   :  { %p491_p1 = pnand %p490_p0, %p484_p11 }
  0x21   :  { %494 = shalt.err (!%p491_p1)
}
  0x22   :  { %33 = dma.hbm_to_vmem [thread:$0]  %s620_s1, 1152, %s28_s24, [#allocation6], %s524_s19, %s524_s19, %s525_s20  }
  0x23   :  { %517 = dma.done.wait [#allocation3], 128  }
  0x24   :  { %518 = vsyncadd [#allocation3], 4294967168 }
  0x25   :  { %519 = dma.done.wait [#allocation6], 1152  }
  0x26   :  { %520 = vsyncadd [#allocation6], 4294966144  ;;  %v527_v0 = vmov 0.0   ;;  %vm528_vm0 = vmmov 0   ;;  %v437_v1 = vld [vmem:[#allocation5] sm:$0xff]   ;;  %v438_v2 = vld [vmem:[#allocation2] sm:$0xff]   ;;  %v61_v5 = vlaneseq }
  0x27   :  { %406 = vmatprep.subr.bf16.mxu0 %v527_v0  ;;  %408 = vmatprep.mubr.msk.bf16.mxu0 %vm528_vm0, %v527_v0  ;;  %vm76_vm1 = vcmask 130048   ;;  %v439_v3 = vld [vmem:[#allocation5 + $0x10] sm:$0xff]   ;;  %v440_v4 = vld [vmem:[#allocation5 + $0x18] sm:$0xff]   ;;  %v45_v7 = vld [vmem:[#allocation5 + $0x8] sm:$0x1]  ;;  %vm140_vm2 = vcmask 261120  }
  0x28   :  { %412 = vmatprep.subr.bf16.mxu1 %v527_v0  ;;  %416 = vmatprep.mubr.msk.bf16.mxu1 %vm528_vm0, %v527_v0  ;;  %v62_v6 = vshrl.u32 %v61_v5, 7  ;;  %v46_v8 = vunpack.c.l.bf16 %v45_v7  ;;  %v441_v20 = vld [vmem:[#allocation5 + $0x28] sm:$0xff]   ;;  %v442_v21 = vld [vmem:[#allocation5 + $0x30] sm:$0xff]   ;;  %v51_v22 = vld [vmem:[#allocation5 + $0x20] sm:$0x1]  ;;  %vm248_vm3 = vcmask 64512  }
  0x29   :  { %407 = vmatpush3.bf16.msra.mxu0 %v437_v1  ;;  %413 = vmatpush3.bf16.msra.mxu1 %v439_v3  ;;  %v52_v23 = vunpack.c.l.bf16 %v51_v22  ;;  %v57_v34 = vld [vmem:[#allocation5 + $0x38] sm:$0x1]  ;;  %v59_v45 = vld [vmem:[#allocation5 + $0x40] sm:$0x1]  ;;  %s529_s1 = smov 8   ;;  %vm274_vm4 = vcmask 130112  }
  0x2a   :  { %420 = vmatprep.subr.bf16.mxu0 %v527_v0  ;;  %414 = vmatprep.subr.bf16.mxu1 %v527_v0  ;;  %v63_v9 = vsub.s32 0, %v62_v6  ;;  %v58_v35 = vunpack.c.l.bf16 %v57_v34  ;;  %v60_v46 = vunpack.c.l.bf16 %v59_v45  ;;  %v306_v60 = vand.u32 127, %v61_v5  ;;  %s530_s6 = smov 120   ;;  %s531_s7 = smov [#allocation7]  }
  0x2b   :  { %vm349_vm9 = vcmask 138240   ;;  %s367_s8 = sshll.u32 %s531_s7, 4  ;;  %s368_s8 = int_to_ptr.vmem [resolvable:$true] %s367_s8 }
  0x2c   :  { %409 = vmatmul.mubr.msk.bf16.vlgmr.msra.gmra.mrb[0].mxu0 %vm76_vm1, %v438_v2  ;;  %v64_v10 = vrot.slane %v46_v8, %v63_v9  ;;  %v127_v24 = vrot.slane %v52_v23, %v63_v9  ;;  %v191_v36 = vrot.slane %v58_v35, %v63_v9  ;;  %v261_v47 = vrot.slane %v60_v46, %v63_v9  ;;  %s495_s9 = scalar_lea.vmem %s368_s8, 128  ;;  %p500_p3 = scmp.lt.s32.totalorder %s368_s8, %s368_s8 }
  0x2d   :  { %424 = vmatprep.mubr.msk.bf16.mxu0 %vm528_vm0, %v527_v0  ;;  %415 = vmatpush3.bf16.msra.mxu1 %v440_v4  ;;  %p496_p2 = scmp.ne.s32.totalorder %s368_s8, %s495_s9  ;;  %p501_p4 = scmp.lt.s32.totalorder %s495_s9, %s495_s9 }
  0x2e   :  { %421 = vmatpush3.bf16.msra.mxu0 %v441_v20 }
  0x2f   :  { %422 = vmatprep.subr.bf16.mxu0 %v527_v0  ;;  %p502_p5 = por %p501_p4, %p500_p3 }
  0x31   :  { %p503_p6 = pnand %p502_p5, %p496_p2 }
  0x32   :  { %423 = vmatpush3.bf16.msra.mxu0 %v442_v21 }
  0xff   :  { %v114_v11 = vpop.f32.mrb[0].mxu0 }
 0x100   :  { %v115_v12 = vadd.f32 %v114_v11, %v64_v10  ;;  %v410_v13 = vpop.f32.mrb[1].mxu0 }
 0x101   :  { %v117_v14 = vpop.f32.mrb[2].mxu0 }
 0x102   :  { %v118_v15 = vadd.f32 %v117_v14, %v64_v10  ;;  %v411_v16 = vpop.f32.mrb[3].mxu0  ;;  %v121_v17 = vmax.f32 %v115_v12, 0.0 }
 0x104   :  { %v122_v18 = vmax.f32 %v118_v15, 0.0 }
 0x106   :  { %v123_v19 = vpack.c.bf16 %v122_v18, %v121_v17 }
 0x108   :  { %417 = vmatmul.mubr.msk.bf16.vlgmr.msra.gmra.mrb[0].mxu1 %vm140_vm2, %v123_v19 }
 0x1db   :  { %v178_v25 = vpop.f32.mrb[0].mxu1 }
 0x1dc   :  { %v179_v26 = vadd.f32 %v178_v25, %v127_v24  ;;  %v418_v27 = vpop.f32.mrb[1].mxu1 }
 0x1dd   :  { %v181_v28 = vpop.f32.mrb[2].mxu1 }
 0x1de   :  { %v182_v29 = vadd.f32 %v181_v28, %v127_v24  ;;  %v419_v30 = vpop.f32.mrb[3].mxu1  ;;  %v185_v31 = vmax.f32 %v179_v26, 0.0 }
 0x1e0   :  { %v186_v32 = vmax.f32 %v182_v29, 0.0 }
 0x1e2   :  { %v187_v33 = vpack.c.bf16 %v186_v32, %v185_v31 }
 0x1e4   :  { %425 = vmatmul.mubr.msk.bf16.vlgmr.msra.gmra.mrb[4].mxu0 %vm140_vm2, %v187_v33 }
 0x2b7   :  { %v241_v37 = vpop.f32.mrb[4].mxu0 }
 0x2b8   :  { %v581_v38 = vadd.f32 %v241_v37, %v191_v36  ;;  %v426_v39 = vpop.f32.mrb[5].mxu0 }
 0x2b9   :  { %v244_v40 = vpop.f32.mrb[6].mxu0 }
 0x2ba   :  { %v583_v41 = vadd.f32 %v244_v40, %v191_v36  ;;  %v427_v42 = vpop.f32.mrb[7].mxu0  ;;  %v249_v43 = vsel %vm248_vm3, %v581_v38, 0.0 }
 0x2bb   :  { %250 = vadd.xlane.f32.xlu0 %v249_v43 }
 0x2bc   :  { %v252_v44 = vsel %vm248_vm3, %v583_v41, 0.0 }
 0x2bf   :  { %253 = vadd.xlane.f32.xlu0 %v252_v44 }
 0x348   :  { %v251_v48 = vpop.xlane.xlu0 %250 }
 0x349   :  { %v256_v49 = vmul.f32 0.125, %v251_v48 }
 0x34b   :  { %v262_v50 = vmul.f32 %v261_v47, %v256_v49 }
 0x34c   :  { %v254_v51 = vpop.xlane.xlu0 %253 }
 0x34d   :  { %v257_v52 = vmul.f32 0.125, %v254_v51  ;;  %266 = vrot.lane.b32.xlu1 %v262_v50, %s529_s1 }
 0x34f   :  { %v263_v53 = vmul.f32 %v261_v47, %v257_v52 }
 0x351   :  { %268 = vrot.lane.b32.xlu1 %v263_v53, %s529_s1 }
 0x3bf   :  { %v267_v54 = vpop.permute.xlu1 %266 }
 0x3c0   :  { %v272_v55 = vadd.f32 %v267_v54, %v581_v38 }
 0x3c2   :  { %v275_v56 = vsel %vm274_vm4, %v272_v55, -inf }
 0x3c3   :  { %276 = vmax.xlane.f32.xlu0 %v275_v56  ;;  %v269_v57 = vpop.permute.xlu1 %268 }
 0x3c4   :  { %v273_v58 = vadd.f32 %v269_v57, %v583_v41 }
 0x3c6   :  { %v278_v59 = vsel %vm274_vm4, %v273_v58, -inf }
 0x3c7   :  { %279 = vmax.xlane.f32.xlu1 %v278_v59 }
 0x3d9   :  { %309 = vrot.lane.b32.xlu0 %v306_v60, %s529_s1 }
 0x450   :  { %v277_v61 = vpop.xlane.xlu0 %276 }
 0x451   :  { %vm307_vm5 = vcmp.ge.f32.partialorder %v272_v55, %v277_v61  ;;  %v281_v8 = vsub.f32 %v272_v55, %v277_v61 }
 0x453   :  { %v283_v5 = vmul.f32 1.442695, %v281_v8 }
 0x454   :  { %v280_v62 = vpop.xlane.xlu1 %279  ;;  %v310_v63 = vpop.permute.xlu0 %309 }
 0x455   :  { %vm308_vm6 = vcmp.ge.f32.partialorder %v273_v58, %v280_v62  ;;  %v311_v0 = vsel %vm307_vm5, %v310_v63, 1073741824  ;;  %v282_v10 = vsub.f32 %v273_v58, %v280_v62  ;;  %443 = vpow2.f32 %v283_v5 }
 0x456   :  { %v312_v1 = vsel %vm308_vm6, %v310_v63, 1073741824  ;;  %v313_v2 = vsel %vm274_vm4, %v311_v0, 2147483647 }
 0x457   :  { %v328_v3 = vsel %vm274_vm4, %v312_v1, 2147483647  ;;  %v315_v4 = vshra.s32 %v313_v2, 16  ;;  %v285_v11 = vmul.f32 1.442695, %v282_v10  ;;  %v314_v17 = vand.u32 65535, %v313_v2 }
 0x458   :  { %v330_v6 = vshra.s32 %v328_v3, 16  ;;  %v329_v22 = vand.u32 65535, %v328_v3 }
 0x459   :  { %v317_v7 = vcvt.s32.f32 %v315_v4  ;;  %445 = vpow2.f32 %v285_v11  ;;  %v316_v21 = vcvt.s32.f32 %v314_v17 }
 0x45a   :  { %v332_v9 = vcvt.s32.f32 %v330_v6  ;;  %v331_v24 = vcvt.s32.f32 %v329_v22 }
 0x45b   :  { %318 = vmin.xlane.f32.xlu0 %v317_v7 }
 0x45c   :  { %333 = vmin.xlane.f32.xlu1 %v332_v9 }
 0x45f   :  { %v444_v12 = vpop.eup %443 }
 0x463   :  { %v446_v13 = vpop.eup %445 }
 0x46d   :  { %289 = vrot.lane.b32.xlu1 %v444_v12, %s530_s6 }
 0x471   :  { %291 = vrot.lane.b32.xlu0 %v446_v13, %s530_s6 }
 0x4e8   :  { %v319_v14 = vpop.xlane.xlu0 %318 }
 0x4e9   :  { %v334_v15 = vpop.xlane.xlu1 %333  ;;  %vm320_vm7 = vcmp.eq.f32.partialorder %v317_v7, %v319_v14  ;;  %v325_v28 = vcvt.f32.s32 %v319_v14 }
 0x4ea   :  { %v321_v23 = vsel %vm320_vm7, %v316_v21, inf  ;;  %vm335_vm8 = vcmp.eq.f32.partialorder %v332_v9, %v334_v15  ;;  %v340_v30 = vcvt.f32.s32 %v334_v15 }
 0x4eb   :  { %v336_v25 = vsel %vm335_vm8, %v331_v24, inf  ;;  %v326_v32 = vshll.u32 %v325_v28, 16 }
 0x4ec   :  { %v292_v16 = vpop.permute.xlu0 %291  ;;  %v341_v34 = vshll.u32 %v340_v30, 16 }
 0x4ed   :  { %v290_v18 = vpop.permute.xlu1 %289  ;;  %v298_v19 = vsel %vm248_vm3, %v292_v16, 0.0 }
 0x4ee   :  { %299 = vadd.xlane.f32.xlu0 %v298_v19  ;;  %v295_v20 = vsel %vm248_vm3, %v290_v18, 0.0 }
 0x4ef   :  { %296 = vadd.xlane.f32.xlu1 %v295_v20 }
 0x4f3   :  { %322 = vmin.xlane.f32.xlu1 %v321_v23 }
 0x4f7   :  { %337 = vmin.xlane.f32.xlu1 %v336_v25 }
 0x57b   :  { %v300_v26 = vpop.xlane.xlu0 %299 }
 0x57c   :  { %447 = vrcp.f32 %v300_v26  ;;  %v297_v27 = vpop.xlane.xlu1 %296 }
 0x57d   :  { %449 = vrcp.f32 %v297_v27 }
 0x580   :  { %v323_v29 = vpop.xlane.xlu1 %322 }
 0x581   :  { %v324_v31 = vcvt.f32.s32 %v323_v29 }
 0x583   :  { %v327_v35 = vadd.s32 %v326_v32, %v324_v31 }
 0x584   :  { %v338_v33 = vpop.xlane.xlu1 %337 }
 0x585   :  { %v339_v36 = vcvt.f32.s32 %v338_v33  ;;  %v343_v44 = vcvt.s32.f32 %v327_v35 }
 0x586   :  { %v448_v37 = vpop.eup %447 }
 0x587   :  { %v450_v39 = vpop.eup %449  ;;  %v304_v40 = vmul.f32 %v448_v37, %v446_v13  ;;  %v342_v42 = vadd.s32 %v341_v34, %v339_v36 }
 0x588   :  { %v303_v43 = vmul.f32 %v450_v39, %v444_v12 }
 0x589   :  { %v344_v45 = vcvt.s32.f32 %v342_v42  ;;  %v346_v46 = vsel %vm248_vm3, %v583_v41, %v304_v40 }
 0x58a   :  { %v345_v47 = vsel %vm248_vm3, %v581_v38, %v303_v43 }
 0x58b   :  { %v347_v48 = vsel %vm76_vm1, %v345_v47, %v343_v44  ;;  %v348_v49 = vsel %vm76_vm1, %v346_v46, %v344_v45 }
 0x58c   :  { %v350_v50 = vsel %vm349_vm9, %v347_v48, 0.0  ;;  %v351_v51 = vsel %vm349_vm9, %v348_v49, 0.0 }
 0x58d   :  { %v396_v52 = vpack.c.bf16 %v351_v51, %v350_v50 }
 0x58f   :  { %397 = vst [vmem:[#allocation7] sm:$0xff] %v396_v52  }
 0x590   :  { %506 = shalt.err (!%p503_p6)
}
 0x591   :  { %s507_s12 = scalar_lea.hbm %s621_s2, 128 }
 0x592   :  { %p508_p7 = scmp.ne.s32.totalorder %s621_s2, %s507_s12  ;;  %p511_p8 = scmp.lt.u32.totalorder %s507_s12, %s621_s2 }
 0x594   :  { %p513_p9 = pnand %p511_p8, %p508_p7 }
 0x596   :  { %516 = shalt.err (!%p513_p9)
}
 0x597   :  { %373 = dma.vmem_to_hbm [thread:$0]  %s368_s8, 128, %s621_s2, [#allocation4], %s524_s19, %s524_s19, %s525_s20  }
 0x598   :  { %521 = dma.done.wait [#allocation4], 128  }
 0x599   :  { %522 = vsyncadd [#allocation4], 4294967168 }
 0x59a   :  { %377 = vsyncpa [#allocation3], 1 }
 0x59b   :  { %378 = vsyncpa [#allocation6], 1 }
 0x59c   :  { %379 = vsyncpa [#allocation4], 1 }

</bundles_post_ra>
